<compile_context>
chip_gen: v7x
topology: tpu7x:2x2x1
jax: 0.10.0
libtpu: 0.0.40
codegen_flags: <defaults>
</compile_context>

<pallas_src>
import jax
import jax.numpy as jnp
from jax.experimental import pallas as pl
from jax.experimental.pallas import tpu as pltpu

# Small synthetic dims (real model: cond_dim=768, feature_dim=1024, cond_length=257).
BATCH       = 2
N_POINTS    = 16     # number of input points (xyz + normal -> 6 channels)
PC_CHANNELS = 6
COND_DIM    = 128    # stands in for 768 (only used to build the folded weights)
FEATURE_DIM = 256    # stands in for 1024
COND_LENGTH = 9      # stands in for 257 (1 head token + 8 body tokens)


def _embed_pc_kernel(tok_ref, wcb_ref, b_ref, wch_ref, bh_ref, o_ref):
    """Fused encode_latents(stub) + embed_pc with pre-folded weights.

    o[r] = tok[r] @ Wc_body + b        for all rows r          (one big MXU pass)
    o[r] = tok[r] @ Wc_head + bh       overwritten for the B head rows

    Operands are bf16, accumulation f32 (preferred_element_type), biases f32.
    The full-tile store is lane-dense (F multiple of 128); only the B head-row
    fixups are masked partial stores.
    """
    toks = tok_ref[...]                                              # (B*L, 6) bf16

    # All rows with the folded body weight (head rows get fixed up below).
    out = jnp.dot(toks, wcb_ref[...],
                  preferred_element_type=jnp.float32) + b_ref[...]   # (B*L, F) f32
    o_ref[...] = out.astype(o_ref.dtype)

    # Fix up the B head rows (token 0 of every batch) with the folded head weight.
    for bi in range(BATCH):                                          # static unroll, B small
        r = bi * COND_LENGTH
        h_tok = tok_ref[pl.ds(r, 1), :]                              # (1, 6) bf16
        h_out = jnp.dot(h_tok, wch_ref[...],
                        preferred_element_type=jnp.float32) + bh_ref[...]
        o_ref[pl.ds(r, 1), :] = h_out.astype(o_ref.dtype)


def embed_pc_pallas(tokens_flat, wc_body, b, wc_head, bh):
    M, C6 = tokens_flat.shape
    F = wc_body.shape[1]
    return pl.pallas_call(
        _embed_pc_kernel,
        out_shape=jax.ShapeDtypeStruct((M, F), jnp.float32),
        grid_spec=pltpu.PrefetchScalarGridSpec(
            num_scalar_prefetch=0,
            grid=(1,),                                    # single step at synthetic shapes
            in_specs=[
                pl.BlockSpec((M, C6), lambda i: (0, 0)),  # tokens (bf16)
                pl.BlockSpec((C6, F), lambda i: (0, 0)),  # folded body weight (bf16)
                pl.BlockSpec((1, F),  lambda i: (0, 0)),  # cond_proj bias (f32)
                pl.BlockSpec((C6, F), lambda i: (0, 0)),  # folded head weight (bf16)
                pl.BlockSpec((1, F),  lambda i: (0, 0)),  # cond_head_proj bias (f32)
            ],
            out_specs=pl.BlockSpec((M, F), lambda i: (0, 0)),         # fused (B*L, F)
        ),
        compiler_params=pltpu.CompilerParams(
            dimension_semantics=("arbitrary",)),
    )(tokens_flat, wc_body, b, wc_head, bh)


def init_params(key):
    ks = jax.random.split(key, 5)
    scale_enc  = 1.0 / jnp.sqrt(PC_CHANNELS)
    scale_proj = 1.0 / jnp.sqrt(COND_DIM)
    return {
        # stub for the frozen point encoder's projection (f32 master copy)
        "w_enc": jax.random.normal(ks[0], (PC_CHANNELS, COND_DIM), jnp.float32) * scale_enc,
        # cond_head_proj = nn.Linear(cond_dim, feature_dim), stored as W^T
        "wh_t": jax.random.normal(ks[1], (COND_DIM, FEATURE_DIM), jnp.float32) * scale_proj,
        "bh":   jax.random.normal(ks[2], (1, FEATURE_DIM), jnp.float32) * 0.01,
        # cond_proj = nn.Linear(cond_dim, feature_dim), stored as W^T
        "w_t":  jax.random.normal(ks[3], (COND_DIM, FEATURE_DIM), jnp.float32) * scale_proj,
        "b":    jax.random.normal(ks[4], (1, FEATURE_DIM), jnp.float32) * 0.01,
    }


def fold_params(params):
    """One-time (model-load time) exact f32 composition of the frozen encoder-stub
    linear with each projection, then cast to bf16 for the MXU.

    Valid because the encoder stub is linear; the real shapevae-256 encoder is
    not, so with the real checkpoint this folding would not apply."""
    wc_head = jnp.dot(params["w_enc"], params["wh_t"])   # (6, F) f32
    wc_body = jnp.dot(params["w_enc"], params["w_t"])    # (6, F) f32
    return {
        "wc_head": wc_head.astype(jnp.bfloat16),
        "wc_body": wc_body.astype(jnp.bfloat16),
        "bh": params["bh"],
        "b":  params["b"],
    }


def point_conditioner_forward(pc, folded):
    """Mirrors PointConditioner.forward(pc=...) with use_meta=False."""
    # TODO(synk): the real self.point_encoder is a frozen pretrained Michelangelo
    # 'shapevae-256' VAE (attention + nonlinearities) loaded from a checkpoint;
    # here it is a deterministic linear projection of the first COND_LENGTH input
    # points, which is what makes the exact weight folding into cond_head_proj /
    # cond_proj possible.
    B = pc.shape[0]
    tokens = pc[:, :COND_LENGTH, :].reshape(B * COND_LENGTH, PC_CHANNELS)
    tokens = tokens.astype(jnp.bfloat16)                              # (B*L, 6)

    out_flat = embed_pc_pallas(tokens, folded["wc_body"], folded["b"],
                               folded["wc_head"], folded["bh"])       # (B*L, F)

    # Free reshape (no concatenate / no extra HBM round-trip).
    pc_embeds = out_flat.reshape(B, COND_LENGTH, FEATURE_DIM)
    # (isnan assert is performed host-side in __main__, matching the torch assert)
    return pc_embeds, None


def _reference_forward(pc, folded):
    """Pure-JAX reference mirroring the kernel numerics (bf16 folded weights,
    f32 accumulation), structured like the PyTorch embed_pc."""
    tokens = pc[:, :COND_LENGTH, :].astype(jnp.bfloat16)              # (B, L, 6)
    head = jnp.dot(tokens[:, 0:1, :], folded["wc_head"],
                   preferred_element_type=jnp.float32) + folded["bh"]
    body = jnp.dot(tokens[:, 1:, :], folded["wc_body"],
                   preferred_element_type=jnp.float32) + folded["b"]
    return jnp.concatenate([head, body], axis=1), None


if __name__ == "__main__":
    key = jax.random.PRNGKey(0)
    k_pc, k_par = jax.random.split(key)
    pc = jax.random.normal(k_pc, (BATCH, N_POINTS, PC_CHANNELS), jnp.float32)
    params = init_params(k_par)
    folded = fold_params(params)

    out, aux = point_conditioner_forward(pc, folded)
    out = jax.block_until_ready(out)

    assert aux is None
    assert out.shape == (BATCH, COND_LENGTH, FEATURE_DIM)
    assert out.dtype == jnp.float32
    assert not bool(jnp.any(jnp.isnan(out))), "NAN values in pc embedings"

    ref, _ = _reference_forward(pc, folded)
    assert jnp.allclose(out, ref, atol=2e-3, rtol=2e-3), "kernel/reference mismatch"

    print("KERNEL_OK")
</pallas_src>

<mosaic_0001>
module attributes {stable_mosaic.version = 11 : i64} {
  func.func @_embed_pc_kernel(%arg0: i32, %arg1: memref<18x6xbf16, #tpu.memory_space<vmem>>, %arg2: memref<6x256xbf16, #tpu.memory_space<vmem>>, %arg3: memref<1x256xf32, #tpu.memory_space<vmem>>, %arg4: memref<6x256xbf16, #tpu.memory_space<vmem>>, %arg5: memref<1x256xf32, #tpu.memory_space<vmem>>, %arg6: memref<18x256xf32, #tpu.memory_space<vmem>>) attributes {dimension_semantics = [#tpu.dimension_semantics<arbitrary>], iteration_bounds = array<i64: 1>, scalar_prefetch = 0 : i64, scratch_operands = 0 : i64, tpu.core_type = #tpu.core_type<tc>, window_params = [{pipeline_mode = #tpu.pipeline_mode<synchronous>, transform_indices = @transform_0, window_bounds = array<i64: 18, 6>}, {pipeline_mode = #tpu.pipeline_mode<synchronous>, transform_indices = @transform_1, window_bounds = array<i64: 6, 256>}, {pipeline_mode = #tpu.pipeline_mode<synchronous>, transform_indices = @transform_2, window_bounds = array<i64: 1, 256>}, {pipeline_mode = #tpu.pipeline_mode<synchronous>, transform_indices = @transform_3, window_bounds = array<i64: 6, 256>}, {pipeline_mode = #tpu.pipeline_mode<synchronous>, transform_indices = @transform_4, window_bounds = array<i64: 1, 256>}, {pipeline_mode = #tpu.pipeline_mode<synchronous>, transform_indices = @transform_5, window_bounds = array<i64: 18, 256>}]} {
    %c0 = arith.constant 0 : index
    %c0_0 = arith.constant 0 : index
    %0 = vector.load %arg1[%c0, %c0_0] : memref<18x6xbf16, #tpu.memory_space<vmem>>, vector<18x6xbf16>
    %c0_1 = arith.constant 0 : index
    %c0_2 = arith.constant 0 : index
    %1 = vector.load %arg2[%c0_1, %c0_2] : memref<6x256xbf16, #tpu.memory_space<vmem>>, vector<6x256xbf16>
    %cst = arith.constant dense<0.000000e+00> : vector<18x256xf32>
    %2 = tpu.matmul %0, %1, %cst {dimension_numbers = #tpu.dot_dimension_numbers<[1], [0], [0], [1], [0, 0, 1, 1], [], []>} : vector<18x6xbf16>, vector<6x256xbf16>, vector<18x256xf32> -> vector<18x256xf32>
    %c0_3 = arith.constant 0 : index
    %c0_4 = arith.constant 0 : index
    %3 = vector.load %arg3[%c0_3, %c0_4] : memref<1x256xf32, #tpu.memory_space<vmem>>, vector<1x256xf32>
    %4 = vector.broadcast %3 : vector<1x256xf32> to vector<18x256xf32>
    %5 = arith.addf %2, %4 : vector<18x256xf32>
    %c0_5 = arith.constant 0 : index
    %c0_6 = arith.constant 0 : index
    %6 = vector.load %arg6[%c0_5, %c0_6] : memref<18x256xf32, #tpu.memory_space<vmem>>, vector<18x256xf32>
    tpu.vector_store %arg6[%c0_5, %c0_6], %5 {strides = array<i32>} : memref<18x256xf32, #tpu.memory_space<vmem>>, vector<18x256xf32>,
    %c0_7 = arith.constant 0 : index
    %c0_8 = arith.constant 0 : index
    %7 = vector.load %arg1[%c0_7, %c0_8] : memref<18x6xbf16, #tpu.memory_space<vmem>>, vector<1x6xbf16>
    %c0_9 = arith.constant 0 : index
    %c0_10 = arith.constant 0 : index
    %8 = vector.load %arg4[%c0_9, %c0_10] : memref<6x256xbf16, #tpu.memory_space<vmem>>, vector<6x256xbf16>
    %cst_11 = arith.constant dense<0.000000e+00> : vector<1x256xf32>
    %9 = tpu.matmul %7, %8, %cst_11 {dimension_numbers = #tpu.dot_dimension_numbers<[1], [0], [0], [1], [0, 0, 1, 1], [], []>} : vector<1x6xbf16>, vector<6x256xbf16>, vector<1x256xf32> -> vector<1x256xf32>
    %c0_12 = arith.constant 0 : index
    %c0_13 = arith.constant 0 : index
    %10 = vector.load %arg5[%c0_12, %c0_13] : memref<1x256xf32, #tpu.memory_space<vmem>>, vector<1x256xf32>
    %11 = arith.addf %9, %10 : vector<1x256xf32>
    %c0_14 = arith.constant 0 : index
    %c0_15 = arith.constant 0 : index
    %12 = vector.load %arg6[%c0_14, %c0_15] : memref<18x256xf32, #tpu.memory_space<vmem>>, vector<1x256xf32>
    tpu.vector_store %arg6[%c0_14, %c0_15], %11 {strides = array<i32>} : memref<18x256xf32, #tpu.memory_space<vmem>>, vector<1x256xf32>,
    %c9 = arith.constant 9 : index
    %c0_16 = arith.constant 0 : index
    %13 = vector.load %arg1[%c9, %c0_16] : memref<18x6xbf16, #tpu.memory_space<vmem>>, vector<1x6xbf16>
    %c0_17 = arith.constant 0 : index
    %c0_18 = arith.constant 0 : index
    %14 = vector.load %arg4[%c0_17, %c0_18] : memref<6x256xbf16, #tpu.memory_space<vmem>>, vector<6x256xbf16>
    %cst_19 = arith.constant dense<0.000000e+00> : vector<1x256xf32>
    %15 = tpu.matmul %13, %14, %cst_19 {dimension_numbers = #tpu.dot_dimension_numbers<[1], [0], [0], [1], [0, 0, 1, 1], [], []>} : vector<1x6xbf16>, vector<6x256xbf16>, vector<1x256xf32> -> vector<1x256xf32>
    %c0_20 = arith.constant 0 : index
    %c0_21 = arith.constant 0 : index
    %16 = vector.load %arg5[%c0_20, %c0_21] : memref<1x256xf32, #tpu.memory_space<vmem>>, vector<1x256xf32>
    %17 = arith.addf %15, %16 : vector<1x256xf32>
    %c9_22 = arith.constant 9 : index
    %c0_23 = arith.constant 0 : index
    %18 = vector.load %arg6[%c9_22, %c0_23] : memref<18x256xf32, #tpu.memory_space<vmem>>, vector<1x256xf32>
    tpu.vector_store %arg6[%c9_22, %c0_23], %17 {strides = array<i32>} : memref<18x256xf32, #tpu.memory_space<vmem>>, vector<1x256xf32>,
    return
  }
  func.func @transform_0(%arg0: i32) -> (i32, i32) {
    %c0_i32 = arith.constant 0 : i32
    %c0_i32_0 = arith.constant 0 : i32
    %c0_i32_1 = arith.constant 0 : i32
    return %c0_i32, %c0_i32_0 : i32, i32
  }
  func.func @transform_1(%arg0: i32) -> (i32, i32) {
    %c0_i32 = arith.constant 0 : i32
    %c0_i32_0 = arith.constant 0 : i32
    %c0_i32_1 = arith.constant 0 : i32
    return %c0_i32, %c0_i32_0 : i32, i32
  }
  func.func @transform_2(%arg0: i32) -> (i32, i32) {
    %c0_i32 = arith.constant 0 : i32
    %c0_i32_0 = arith.constant 0 : i32
    %c0_i32_1 = arith.constant 0 : i32
    return %c0_i32, %c0_i32_0 : i32, i32
  }
  func.func @transform_3(%arg0: i32) -> (i32, i32) {
    %c0_i32 = arith.constant 0 : i32
    %c0_i32_0 = arith.constant 0 : i32
    %c0_i32_1 = arith.constant 0 : i32
    return %c0_i32, %c0_i32_0 : i32, i32
  }
  func.func @transform_4(%arg0: i32) -> (i32, i32) {
    %c0_i32 = arith.constant 0 : i32
    %c0_i32_0 = arith.constant 0 : i32
    %c0_i32_1 = arith.constant 0 : i32
    return %c0_i32, %c0_i32_0 : i32, i32
  }
  func.func @transform_5(%arg0: i32) -> (i32, i32) {
    %c0_i32 = arith.constant 0 : i32
    %c0_i32_0 = arith.constant 0 : i32
    %c0_i32_1 = arith.constant 0 : i32
    return %c0_i32, %c0_i32_0 : i32, i32
  }
}

</mosaic_0001>

<bundles_post_ra>
// kernel: tpu_custom_call.1
= control target key start
LH: loop header
LB: loop body
LE: loop exit
PB: predicated region body
PF: predicated region fallthrough
CT: control target
= control target key end

     0   :  { %vm58_vm0 = vcmask 1042432   ;;  %v381_v4 = vmov 0   ;;  %vm51_vm1 = vcmask 48128   ;;  %s476_s0 = inlined_call_operand.vmem [shape: bf16[18,6], index: 0, kind: input, shape index: {}]   ;;  %s477_s1 = inlined_call_operand.vmem [shape: bf16[6,256], index: 1, kind: input, shape index: {}]   ;;  %s478_s2 = inlined_call_operand.vmem [shape: f32[1,256], index: 2, kind: input, shape index: {}]   ;;  %s479_s3 = inlined_call_operand.vmem [shape: bf16[6,256], index: 3, kind: input, shape index: {}]   ;;  %s480_s4 = inlined_call_operand.vmem [shape: f32[1,256], index: 4, kind: input, shape index: {}]   ;;  %s481_s5 = inlined_call_operand.hbm [shape: f32[18,256], index: 5, kind: output, shape index: {}]  }
   0x1   :  { %v123_v0 = vld [vmem:[%s479_s3] sm:$0x77]  ;;  %182 = vmatprep.mubr.bf16.mxu1 %v381_v4  ;;  %97 = vmatprep.mubr.bf16.mxu0 %v381_v4 }
   0x2   :  { %v25_v1 = vld [vmem:[%s477_s1] sm:$0x77]  ;;  %v335_v2 = vcombine.high %v123_v0, %v123_v0  ;;  %v334_v3 = vcombine.low %v123_v0, %v123_v0 }
   0x3   :  { %v330_v5 = vcombine.high %v25_v1, %v25_v1  ;;  %v216_v6 = vld [vmem:[%s479_s3] sm:$0x77]  ;;  %v329_v8 = vcombine.low %v25_v1, %v25_v1 }
   0x4   :  { %v340_v7 = vcombine.high %v216_v6, %v216_v6  ;;  %v339_v9 = vcombine.low %v216_v6, %v216_v6  ;;  %336 = vmatprep.subr.msk.bf16.mxu1 %vm58_vm0, %v335_v2  ;;  %v145_v10 = vsel %vm58_vm0, %v334_v3, 0  ;;  %v122_v11 = vld [vmem:[%s476_s0] sm:$0x1] }
   0x5   :  { %331 = vmatprep.subr.msk.bf16.mxu0 %vm58_vm0, %v330_v5  ;;  %151 = vmatpush1.bf16.msra.mxu1 %v145_v10  ;;  %v60_v12 = vsel %vm58_vm0, %v329_v8, 0  ;;  %v354_v13 = vld [vmem:[%s476_s0] sm:$0xff]  }
   0x6   :  { %341 = vmatprep.subr.msk.bf16.mxu1 %vm58_vm0, %v340_v7  ;;  %66 = vmatpush1.bf16.msra.mxu0 %v60_v12  ;;  %v244_v14 = vsel %vm58_vm0, %v339_v9, 0 }
   0x7   :  { %10 = vsyncpa [#allocation3], 0  ;;  %v355_v15 = vld [vmem:[%s476_s0 + $0x4] ss:$0 sps:$4 sm:$0x11]   ;;  %v28_v18 = vlaneseq }
   0x8   :  { %337 = vmatmul.mubr.msk.bf16.vlgmr.msra.gmra.mrb[0].mxu1 %vm51_vm1, %v122_v11  ;;  %v222_v16 = vshrl.u32 %v355_v15, 16  ;;  %v356_v17 = vld [vmem:[%s476_s0 + $0x8] ss:$0 sps:$4 sm:$0x11]   ;;  %v124_v21 = vld [vmem:[%s480_s4] sm:$0x3] }
   0x9   :  { %250 = vmatpush1.bf16.msra.mxu1 %v244_v14  ;;  %332 = vmatmul.mubr.msk.bf16.vlgmr.msra.gmra.mrb[0].mxu0 %vm51_vm1, %v354_v13  ;;  %v29_v19 = vshrl.u32 %v28_v18, 7  ;;  %v382_v23 = vmov 1966171168   ;;  %v26_v25 = vld [vmem:[%s478_s2] sm:$0x3]  ;;  %vm456_vm2 = vcmp.lt.s32.totalorder %v28_v18, 256 }
   0xa   :  { %281 = vmatprep.mubr.bf16.mxu1 %v381_v4  ;;  %107 = vmatprep.mubr.bf16.mxu0 %v381_v4  ;;  %v195_v24 = vunpack.c.l.s4 %v382_v23  ;;  %v217_v40 = vld [vmem:[%s480_s4] sm:$0x3]  ;;  %s383_s2 = smov [#allocation2]  }
   0xb   :  { %v30_v20 = vsub.s32 0, %v29_v19  ;;  %v34_v22 = vsub.s32 1, %v29_v19  ;;  %s316_s4 = sshll.u32 %s383_s2, 4  ;;  %s317_s4 = int_to_ptr.vmem [resolvable:$true] %s316_s4 }
   0xc   :  { %v196_v28 = vunpack.c.0.s8 %v195_v24  ;;  %s357_s10 = scalar_lea.vmem %s317_s4, 768  ;;  %p362_p1 = scmp.lt.s32.totalorder %s317_s4, %s317_s4 }
   0xd   :  { %v134_v26 = vrot.slane %v124_v21, %v30_v20  ;;  %v138_v27 = vrot.slane %v124_v21, %v34_v22  ;;  %v31_v29 = vrot.slane %v26_v25, %v30_v20  ;;  %v35_v30 = vrot.slane %v26_v25, %v34_v22  ;;  %p358_p0 = scmp.ne.s32.totalorder %s317_s4, %s357_s10  ;;  %p363_p2 = scmp.lt.s32.totalorder %s357_s10, %s357_s10 }
   0xe   :  { %v199_v36 = vsub.s32 %v196_v28, %v29_v19  ;;  %v233_v48 = vrot.slane %v217_v40, %v30_v20  ;;  %v237_v50 = vrot.slane %v217_v40, %v34_v22 }
   0xf   :  { %p364_p3 = por %p363_p2, %p362_p1 }
  0x10   :  { %342 = vmatmul.mubr.msk.bf16.vlgmr.msra.gmra.mrb[4].mxu1 %vm51_vm1, %v222_v16 }
  0x11   :  { %333 = vmatmul.mubr.msk.bf16.gmra.mrb[4].mxu0 %vm51_vm1, %v356_v17  ;;  %p365_p4 = pnand %p364_p3, %p358_p0 }
  0xdb   :  { %v184_v31 = vpop.f32.mrb[0].mxu1 }
  0xdc   :  { %v185_v32 = vadd.f32 %v184_v31, %v134_v26  ;;  %v186_v33 = vpop.f32.mrb[1].mxu1  ;;  %v99_v34 = vpop.f32.mrb[0].mxu0 }
  0xdd   :  { %v187_v35 = vadd.f32 %v186_v33, %v138_v27  ;;  %v188_v37 = vpop.f32.mrb[2].mxu1  ;;  %v100_v38 = vadd.f32 %v99_v34, %v31_v29  ;;  %v101_v39 = vpop.f32.mrb[1].mxu0 }
  0xde   :  { %v189_v41 = vpop.f32.mrb[3].mxu1  ;;  %v102_v42 = vadd.f32 %v101_v39, %v35_v30  ;;  %v103_v43 = vpop.f32.mrb[2].mxu0 }
  0xdf   :  { %v193_v44 = vcombine.low %v185_v32, %v187_v35  ;;  %116 = vst [vmem:[#allocation2] sm:$0xff] %v100_v38  ;;  %v104_v45 = vadd.f32 %v103_v43, %v31_v29  ;;  %v105_v46 = vpop.f32.mrb[3].mxu0 }
  0xe0   :  { %117 = vst [vmem:[#allocation2 + $0x8] sm:$0xff] %v102_v42  ;;  %v106_v47 = vadd.f32 %v105_v46, %v35_v30 }
  0xe1   :  { %v200_v49 = vrot.slane %v193_v44, %v199_v36  ;;  %118 = vst [vmem:[#allocation2 + $0x10] sm:$0xff] %v104_v45 }
  0xe2   :  { %119 = vst [vmem:[#allocation2 + $0x18] sm:$0xff] %v106_v47 }
  0xe3   :  { %v207_v52 = vrot.slane %v200_v49, %v199_v36  ;;  %v283_v53 = vpop.f32.mrb[4].mxu1 }
  0xe4   :  { %v284_v54 = vadd.f32 %v283_v53, %v233_v48  ;;  %v285_v55 = vpop.f32.mrb[5].mxu1  ;;  %v109_v56 = vpop.f32.mrb[4].mxu0 }
  0xe5   :  { %213 = vst.msk [vmem:[#allocation2] ss:$8 sm:$0x3] %vm456_vm2, %v207_v52  ;;  %v286_v57 = vadd.f32 %v285_v55, %v237_v50  ;;  %v287_v58 = vpop.f32.mrb[6].mxu1  ;;  %v110_v59 = vadd.f32 %v109_v56, %v31_v29  ;;  %v111_v60 = vpop.f32.mrb[5].mxu0 }
  0xe6   :  { %v288_v61 = vpop.f32.mrb[7].mxu1  ;;  %v112_v62 = vadd.f32 %v111_v60, %v35_v30  ;;  %v113_v63 = vpop.f32.mrb[6].mxu0 }
  0xe7   :  { %v292_v0 = vcombine.low %v284_v54, %v286_v57  ;;  %120 = vst [vmem:[#allocation2 + $0x20] sm:$0x3] %v110_v59  ;;  %v114_v1 = vpop.f32.mrb[7].mxu0 }
  0xe8   :  { %121 = vst [vmem:[#allocation2 + $0x28] sm:$0x3] %v112_v62 }
  0xe9   :  { %v299_v2 = vrot.slane %v292_v0, %v199_v36 }
  0xeb   :  { %v306_v3 = vrot.slane %v299_v2, %v199_v36 }
  0xed   :  { %309 = vst.msk [vmem:[#allocation2 + $0x11] ss:$8 sm:$0x3] %vm456_vm2, %v306_v3 }
  0xee   :  { %368 = shalt.err (!%p365_p4)
}
  0xef   :  { %s369_s13 = scalar_lea.hbm %s481_s5, 768 }
  0xf0   :  { %p370_p5 = scmp.ne.s32.totalorder %s481_s5, %s369_s13  ;;  %p373_p6 = scmp.lt.u32.totalorder %s369_s13, %s481_s5 }
  0xf2   :  { %p375_p7 = pnand %p373_p6, %p370_p5 }
  0xf4   :  { %378 = shalt.err (!%p375_p7)
}
  0xf5   :  { %s384_s18 = smov 256   ;;  %s385_s19 = smov 16  }
  0xf6   :  { %322 = dma.vmem_to_hbm [thread:$0]  %s317_s4, 768, %s481_s5, [#allocation3], %s384_s18, %s384_s18, %s385_s19  }
  0xf7   :  { %379 = dma.done.wait [#allocation3], 768  }
  0xf8   :  { %380 = vsyncadd [#allocation3], 4294966528 }
  0xf9   :  { %326 = vsyncpa [#allocation3], 1 }

</bundles_post_ra>
